<compile_context>
chip_gen: v7x
topology: tpu7x:2x2x1
jax: 0.10.0
libtpu: 0.0.40
codegen_flags: <defaults>
</compile_context>

<pallas_src>
import jax
import jax.numpy as jnp
from jax.experimental import pallas as pl
from jax.experimental.pallas import tpu as pltpu


def _round_up(x: int, m: int) -> int:
    return ((x + m - 1) // m) * m


def _sublane_pack(dtype) -> int:
    """Rows per vreg sublane tile for this dtype (f32:8, bf16:16, 8-bit:32)."""
    size = jnp.dtype(dtype).itemsize
    if size >= 4:
        return 8
    if size == 2:
        return 16
    return 32


def _pick_tile_k(c_h: int, tile_k: int):
    """Pick a reduction tile. Prefer a divisor of C_h (multiple of 128) so no
    weight padding has to be materialized; fall back to padding otherwise."""
    if c_h <= tile_k:
        return c_h, c_h
    d = (tile_k // 128) * 128
    while d >= 128:
        if c_h % d == 0:
            return d, c_h
        d -= 128
    tk = _round_up(min(tile_k, c_h), 128)
    return tk, _round_up(c_h, tk)


def mlp_kernel(x_ref, w1_ref, b1_ref, w2_ref, b2_ref, o_ref, acc_ref):
    k = pl.program_id(1)

    @pl.when(k == 0)
    def _init():
        acc_ref[...] = jnp.zeros_like(acc_ref)

    # fc1 partial: [tile_s, C_in] @ [C_in, tile_k] -> f32 accumulate on MXU.
    h = jnp.dot(x_ref[...], w1_ref[...], preferred_element_type=jnp.float32)
    h = h + b1_ref[...].astype(jnp.float32)

    # QuickGELU in f32 (sigmoid goes to the EUP slot).
    h = h * jax.nn.sigmoid(1.702 * h)

    # fc2 partial: cast activation back to the weight dtype for the MXU feed,
    # accumulate in the f32 VMEM scratch.
    acc_ref[...] += jnp.dot(h.astype(w2_ref.dtype), w2_ref[...],
                            preferred_element_type=jnp.float32)

    @pl.when(k == pl.num_programs(1) - 1)
    def _finalize():
        y = acc_ref[...] + b2_ref[...].astype(jnp.float32)
        o_ref[...] = y.astype(o_ref.dtype)


def qwen2_vision_mlp(x, w1, b1, w2, b2, *, tile_s=1024, tile_k=1280,
                     vmem_limit_bytes=48 * 1024 * 1024):
    """x: [S, C_in]; w1: [C_in, C_h]; b1: [C_h]; w2: [C_h, C_in]; b2: [C_in]."""
    S, C_in = x.shape
    C_h = w1.shape[1]

    x_bytes = jnp.dtype(x.dtype).itemsize
    w_bytes = jnp.dtype(w1.dtype).itemsize

    # --- token tiling: dtype-aware sublane multiple, capped by padded S ------
    sub = max(_sublane_pack(x.dtype), 8)
    ts = min(tile_s, _round_up(S, sub))
    ts = _round_up(ts, sub)

    # --- hidden-dim (reduction) tiling ---------------------------------------
    tk, C_h_pad = _pick_tile_k(C_h, tile_k)

    # --- shrink the token tile if the requested config would blow VMEM -------
    def vmem_estimate(ts_, tk_):
        io = 2 * 2 * ts_ * C_in * x_bytes          # x + out, double-buffered
        w = 2 * 2 * C_in * tk_ * w_bytes           # W1 + W2 slabs, double-buffered
        acc = ts_ * C_in * 4                       # f32 accumulator scratch
        h_tmp = ts_ * tk_ * 4                      # f32 QuickGELU intermediate
        return io + w + acc + h_tmp

    budget = int(vmem_limit_bytes * 0.9)
    while vmem_estimate(ts, tk) > budget and ts > 4 * sub:
        ts = max(_round_up(ts // 2, sub), sub)

    S_pad = _round_up(S, ts)

    # --- zero-pad fall-back (padded b1 entries and W2 rows are zero, and
    #     QuickGELU(0) = 0, so padding contributes exactly 0) -----------------
    if S_pad != S:
        x = jnp.pad(x, ((0, S_pad - S), (0, 0)))
    if C_h_pad != C_h:
        w1 = jnp.pad(w1, ((0, 0), (0, C_h_pad - C_h)))
        b1 = jnp.pad(b1, ((0, C_h_pad - C_h),))
        w2 = jnp.pad(w2, ((0, C_h_pad - C_h), (0, 0)))

    # Keep biases 2D so they live as clean (sublane, lane) tiles in VMEM.
    b1_2d = b1.reshape(1, C_h_pad)
    b2_2d = b2.reshape(1, C_in)

    n_token_tiles = S_pad // ts
    n_k_tiles = C_h_pad // tk
    grid = (n_token_tiles, n_k_tiles)

    cost = pl.CostEstimate(
        flops=4 * S_pad * C_in * C_h_pad,
        transcendentals=S_pad * C_h_pad,
        bytes_accessed=(S_pad * C_in * x_bytes * 2                       # x + out
                        + 2 * C_in * C_h_pad * w_bytes * n_token_tiles   # W1+W2 streamed per tile
                        + (C_h_pad + C_in) * 4),                         # biases
    )

    out = pl.pallas_call(
        mlp_kernel,
        out_shape=jax.ShapeDtypeStruct((S_pad, C_in), x.dtype),
        grid_spec=pltpu.PrefetchScalarGridSpec(
            num_scalar_prefetch=0,
            grid=grid,
            in_specs=[
                pl.BlockSpec((ts, C_in), lambda i, k: (i, 0)),    # x tokens
                pl.BlockSpec((C_in, tk), lambda i, k: (0, k)),    # W1 k-slab
                pl.BlockSpec((1, tk), lambda i, k: (0, k)),       # b1 k-slab
                pl.BlockSpec((tk, C_in), lambda i, k: (k, 0)),    # W2 k-slab
                pl.BlockSpec((1, C_in), lambda i, k: (0, 0)),     # b2
            ],
            out_specs=pl.BlockSpec((ts, C_in), lambda i, k: (i, 0)),
            scratch_shapes=[pltpu.VMEM((ts, C_in), jnp.float32)],
        ),
        compiler_params=pltpu.CompilerParams(
            dimension_semantics=("parallel", "arbitrary"),
            vmem_limit_bytes=vmem_limit_bytes),
        cost_estimate=cost,
    )(x, w1, b1_2d, w2, b2_2d)

    if S_pad != S:
        out = out[:S]
    return out


def reference_mlp(x, w1, b1, w2, b2):
    x = x.astype(jnp.float32)
    w1 = w1.astype(jnp.float32)
    b1 = b1.astype(jnp.float32)
    w2 = w2.astype(jnp.float32)
    b2 = b2.astype(jnp.float32)
    h = x @ w1 + b1
    h = h * jax.nn.sigmoid(1.702 * h)
    return h @ w2 + b2


if __name__ == "__main__":
    key = jax.random.PRNGKey(0)

    # --- case 1: toy shapes, single reduction step ---------------------------
    S, C_in, C_h = 16, 32, 64
    kx, k1, kb1, k2, kb2, key = jax.random.split(key, 6)
    x = jax.random.normal(kx, (S, C_in), dtype=jnp.float32)
    w1 = jax.random.normal(k1, (C_in, C_h), dtype=jnp.float32) * 0.02
    b1 = jax.random.normal(kb1, (C_h,), dtype=jnp.float32) * 0.02
    w2 = jax.random.normal(k2, (C_h, C_in), dtype=jnp.float32) * 0.02
    b2 = jax.random.normal(kb2, (C_in,), dtype=jnp.float32) * 0.02

    out = jax.block_until_ready(qwen2_vision_mlp(x, w1, b1, w2, b2))
    ref = reference_mlp(x, w1, b1, w2, b2)
    assert out.shape == (S, C_in)
    assert jnp.allclose(out, ref, atol=1e-5, rtol=1e-5), "case1 mismatch"

    # --- case 2: exercises token padding + multi-step hidden reduction -------
    S, C_in, C_h = 20, 128, 256
    kx, k1, kb1, k2, kb2, key = jax.random.split(key, 6)
    x = jax.random.normal(kx, (S, C_in), dtype=jnp.float32)
    w1 = jax.random.normal(k1, (C_in, C_h), dtype=jnp.float32) * 0.02
    b1 = jax.random.normal(kb1, (C_h,), dtype=jnp.float32) * 0.02
    w2 = jax.random.normal(k2, (C_h, C_in), dtype=jnp.float32) * 0.02
    b2 = jax.random.normal(kb2, (C_in,), dtype=jnp.float32) * 0.02

    out = jax.block_until_ready(
        qwen2_vision_mlp(x, w1, b1, w2, b2, tile_s=8, tile_k=128))
    ref = reference_mlp(x, w1, b1, w2, b2)
    assert out.shape == (S, C_in)
    assert jnp.allclose(out, ref, atol=1e-4, rtol=1e-4), "case2 mismatch"

    # --- case 3: bf16 inputs/weights (16-sublane rounding, divisor tile_k) ---
    S, C_in, C_h = 24, 256, 512
    kx, k1, kb1, k2, kb2, key = jax.random.split(key, 6)
    x = (jax.random.normal(kx, (S, C_in), dtype=jnp.float32)).astype(jnp.bfloat16)
    w1 = (jax.random.normal(k1, (C_in, C_h), dtype=jnp.float32) * 0.02).astype(jnp.bfloat16)
    b1 = (jax.random.normal(kb1, (C_h,), dtype=jnp.float32) * 0.02).astype(jnp.bfloat16)
    w2 = (jax.random.normal(k2, (C_h, C_in), dtype=jnp.float32) * 0.02).astype(jnp.bfloat16)
    b2 = (jax.random.normal(kb2, (C_in,), dtype=jnp.float32) * 0.02).astype(jnp.bfloat16)

    out = jax.block_until_ready(
        qwen2_vision_mlp(x, w1, b1, w2, b2, tile_s=1024, tile_k=256))
    ref = reference_mlp(x, w1, b1, w2, b2)
    assert out.shape == (S, C_in)
    assert jnp.allclose(out.astype(jnp.float32), ref, atol=2e-2, rtol=5e-2), \
        "case3 mismatch"

    print("KERNEL_OK")
</pallas_src>

<mosaic_0001>
module attributes {stable_mosaic.version = 11 : i64} {
  func.func @mlp_kernel(%arg0: i32, %arg1: i32, %arg2: memref<16x32xf32, #tpu.memory_space<vmem>>, %arg3: memref<32x64xf32, #tpu.memory_space<vmem>>, %arg4: memref<1x64xf32, #tpu.memory_space<vmem>>, %arg5: memref<64x32xf32, #tpu.memory_space<vmem>>, %arg6: memref<1x32xf32, #tpu.memory_space<vmem>>, %arg7: memref<16x32xf32, #tpu.memory_space<vmem>>, %arg8: memref<16x32xf32, #tpu.memory_space<vmem>>) attributes {dimension_semantics = [#tpu.dimension_semantics<parallel>, #tpu.dimension_semantics<arbitrary>], iteration_bounds = array<i64: 1, 1>, scalar_prefetch = 0 : i64, scratch_operands = 1 : i64, tpu.core_type = #tpu.core_type<tc>, window_params = [{transform_indices = @transform_0, window_bounds = array<i64: 16, 32>}, {transform_indices = @transform_1, window_bounds = array<i64: 32, 64>}, {transform_indices = @transform_2, window_bounds = array<i64: 1, 64>}, {transform_indices = @transform_3, window_bounds = array<i64: 64, 32>}, {pipeline_mode = #tpu.pipeline_mode<synchronous>, transform_indices = @transform_4, window_bounds = array<i64: 1, 32>}, {transform_indices = @transform_5, window_bounds = array<i64: 16, 32>}]} {
    %c0_i32 = arith.constant 0 : i32
    %0 = arith.cmpi eq, %arg1, %c0_i32 : i32
    %1 = arith.extui %0 : i1 to i32
    %c0_i32_0 = arith.constant 0 : i32
    %2 = arith.cmpi ne, %1, %c0_i32_0 : i32
    scf.if %2 {
      %cst_17 = arith.constant 0.000000e+00 : f32
      %25 = vector.broadcast %cst_17 : f32 to vector<16x32xf32>
      %c0_18 = arith.constant 0 : index
      %c0_19 = arith.constant 0 : index
      %26 = vector.load %arg8[%c0_18, %c0_19] : memref<16x32xf32, #tpu.memory_space<vmem>>, vector<16x32xf32>
      tpu.vector_store %arg8[%c0_18, %c0_19], %25 {strides = array<i32>} : memref<16x32xf32, #tpu.memory_space<vmem>>, vector<16x32xf32>,
    } else {
    }
    %c0 = arith.constant 0 : index
    %c0_1 = arith.constant 0 : index
    %3 = vector.load %arg2[%c0, %c0_1] : memref<16x32xf32, #tpu.memory_space<vmem>>, vector<16x32xf32>
    %c0_2 = arith.constant 0 : index
    %c0_3 = arith.constant 0 : index
    %4 = vector.load %arg3[%c0_2, %c0_3] : memref<32x64xf32, #tpu.memory_space<vmem>>, vector<32x64xf32>
    %cst = arith.constant dense<0.000000e+00> : vector<16x64xf32>
    %5 = tpu.matmul %3, %4, %cst {dimension_numbers = #tpu.dot_dimension_numbers<[1], [0], [0], [1], [0, 0, 1, 1], [], []>} : vector<16x32xf32>, vector<32x64xf32>, vector<16x64xf32> -> vector<16x64xf32>
    %c0_4 = arith.constant 0 : index
    %c0_5 = arith.constant 0 : index
    %6 = vector.load %arg4[%c0_4, %c0_5] : memref<1x64xf32, #tpu.memory_space<vmem>>, vector<1x64xf32>
    %7 = vector.broadcast %6 : vector<1x64xf32> to vector<16x64xf32>
    %8 = arith.addf %5, %7 : vector<16x64xf32>
    %cst_6 = arith.constant 1.702000e+00 : f32
    %9 = vector.broadcast %cst_6 : f32 to vector<16x64xf32>
    %10 = arith.mulf %9, %8 : vector<16x64xf32>
    %11 = arith.negf %10 : vector<16x64xf32>
    %12 = math.exp %11 : vector<16x64xf32>
    %cst_7 = arith.constant 1.000000e+00 : f32
    %13 = vector.broadcast %cst_7 : f32 to vector<16x64xf32>
    %14 = arith.addf %13, %12 : vector<16x64xf32>
    %15 = arith.divf %13, %14 : vector<16x64xf32>
    %16 = arith.mulf %8, %15 : vector<16x64xf32>
    %c0_8 = arith.constant 0 : index
    %c0_9 = arith.constant 0 : index
    %17 = vector.load %arg8[%c0_8, %c0_9] : memref<16x32xf32, #tpu.memory_space<vmem>>, vector<16x32xf32>
    %c0_10 = arith.constant 0 : index
    %c0_11 = arith.constant 0 : index
    %18 = vector.load %arg5[%c0_10, %c0_11] : memref<64x32xf32, #tpu.memory_space<vmem>>, vector<64x32xf32>
    %cst_12 = arith.constant dense<0.000000e+00> : vector<16x32xf32>
    %19 = tpu.matmul %16, %18, %cst_12 {dimension_numbers = #tpu.dot_dimension_numbers<[1], [0], [0], [1], [0, 0, 1, 1], [], []>} : vector<16x64xf32>, vector<64x32xf32>, vector<16x32xf32> -> vector<16x32xf32>
    %20 = arith.addf %17, %19 : vector<16x32xf32>
    %c0_13 = arith.constant 0 : index
    %c0_14 = arith.constant 0 : index
    %21 = vector.load %arg8[%c0_13, %c0_14] : memref<16x32xf32, #tpu.memory_space<vmem>>, vector<16x32xf32>
    tpu.vector_store %arg8[%c0_13, %c0_14], %20 {strides = array<i32>} : memref<16x32xf32, #tpu.memory_space<vmem>>, vector<16x32xf32>,
    %c0_i32_15 = arith.constant 0 : i32
    %22 = arith.cmpi eq, %arg1, %c0_i32_15 : i32
    %23 = arith.extui %22 : i1 to i32
    %c0_i32_16 = arith.constant 0 : i32
    %24 = arith.cmpi ne, %23, %c0_i32_16 : i32
    scf.if %24 {
      %c0_17 = arith.constant 0 : index
      %c0_18 = arith.constant 0 : index
      %25 = vector.load %arg8[%c0_17, %c0_18] : memref<16x32xf32, #tpu.memory_space<vmem>>, vector<16x32xf32>
      %c0_19 = arith.constant 0 : index
      %c0_20 = arith.constant 0 : index
      %26 = vector.load %arg6[%c0_19, %c0_20] : memref<1x32xf32, #tpu.memory_space<vmem>>, vector<1x32xf32>
      %27 = vector.broadcast %26 : vector<1x32xf32> to vector<16x32xf32>
      %28 = arith.addf %25, %27 : vector<16x32xf32>
      %c0_21 = arith.constant 0 : index
      %c0_22 = arith.constant 0 : index
      %29 = vector.load %arg7[%c0_21, %c0_22] : memref<16x32xf32, #tpu.memory_space<vmem>>, vector<16x32xf32>
      tpu.vector_store %arg7[%c0_21, %c0_22], %28 {strides = array<i32>} : memref<16x32xf32, #tpu.memory_space<vmem>>, vector<16x32xf32>,
    } else {
    }
    return
  }
  func.func @transform_0(%arg0: i32, %arg1: i32) -> (i32, i32) {
    %c0_i32 = arith.constant 0 : i32
    %c0_i32_0 = arith.constant 0 : i32
    return %arg0, %c0_i32 : i32, i32
  }
  func.func @transform_1(%arg0: i32, %arg1: i32) -> (i32, i32) {
    %c0_i32 = arith.constant 0 : i32
    %c0_i32_0 = arith.constant 0 : i32
    return %c0_i32, %arg1 : i32, i32
  }
  func.func @transform_2(%arg0: i32, %arg1: i32) -> (i32, i32) {
    %c0_i32 = arith.constant 0 : i32
    %c0_i32_0 = arith.constant 0 : i32
    return %c0_i32, %arg1 : i32, i32
  }
  func.func @transform_3(%arg0: i32, %arg1: i32) -> (i32, i32) {
    %c0_i32 = arith.constant 0 : i32
    %c0_i32_0 = arith.constant 0 : i32
    return %arg1, %c0_i32 : i32, i32
  }
  func.func @transform_4(%arg0: i32, %arg1: i32) -> (i32, i32) {
    %c0_i32 = arith.constant 0 : i32
    %c0_i32_0 = arith.constant 0 : i32
    %c0_i32_1 = arith.constant 0 : i32
    return %c0_i32, %c0_i32_0 : i32, i32
  }
  func.func @transform_5(%arg0: i32, %arg1: i32) -> (i32, i32) {
    %c0_i32 = arith.constant 0 : i32
    %c0_i32_0 = arith.constant 0 : i32
    return %arg0, %c0_i32 : i32, i32
  }
}

</mosaic_0001>

<bundles_post_ra>
// kernel: tpu_custom_call.1
= control target key start
LH: loop header
LB: loop body
LE: loop exit
PB: predicated region body
PF: predicated region fallthrough
CT: control target
= control target key end

     0   :  { %vm25_vm0 = vcmask 261120   ;;  %s483_s0 = inlined_call_operand.vmem [shape: f32[16,32], index: 0, kind: input, shape index: {}]   ;;  %s484_s1 = inlined_call_operand.vmem [shape: f32[32,64], index: 1, kind: input, shape index: {}]   ;;  %s485_s2 = inlined_call_operand.vmem [shape: f32[1,64], index: 2, kind: input, shape index: {}]   ;;  %s486_s3 = inlined_call_operand.vmem [shape: f32[64,32], index: 3, kind: input, shape index: {}]   ;;  %s487_s4 = inlined_call_operand.vmem [shape: f32[1,32], index: 4, kind: input, shape index: {}]   ;;  %s488_s5 = inlined_call_operand.hbm [shape: f32[16,32], index: 5, kind: output, shape index: {}]  }
   0x1   :  { %v30_v0 = vld [vmem:[%s484_s1] sm:$0xff]  ;;  %v31_v1 = vld [vmem:[%s484_s1 + $0x8] sm:$0xff]  ;;  %v32_v2 = vld [vmem:[%s484_s1 + $0x10] sm:$0xff] }
   0x2   :  { %v321_v3 = vpack.c.bf16 %v31_v1, %v30_v0  ;;  %v33_v4 = vld [vmem:[%s484_s1 + $0x18] sm:$0xff]  ;;  %v28_v5 = vld [vmem:[%s483_s0] sm:$0xff] }
   0x3   :  { %v325_v6 = vpack.c.bf16 %v33_v4, %v32_v2  ;;  %299 = vmatprep.mubr.msk.f32.mxu0 %vm25_vm0, %v28_v5 }
   0x4   :  { %10 = vsyncpa [#allocation4], 0  ;;  %322 = vmatprep.subr.bf16.mxu0 %v321_v3  ;;  %v29_v7 = vld [vmem:[%s483_s0 + $0x8] sm:$0xff]  ;;  %v141_v8 = vld [vmem:[%s486_s3] sm:$0xff]  ;;  %v381_v20 = vmov 0.0   ;;  %vm149_vm1 = vcmask 523264  }
   0x5   :  { %324 = vmatpush3.bf16.msra.mxu0 %v321_v3  ;;  %v142_v9 = vld [vmem:[%s486_s3 + $0x8] sm:$0xff]  ;;  %v143_v11 = vld [vmem:[%s486_s3 + $0x10] sm:$0xff]  ;;  %v144_v12 = vld [vmem:[%s486_s3 + $0x18] sm:$0xff]  ;;  %27 = vst.msk [vmem:[#allocation2 + $0x8] sm:$0xff] %vm25_vm0, %v381_v20  ;;  %s382_s21 = smov [#allocation3]  }
   0x6   :  { %326 = vmatprep.subr.bf16.mxu0 %v325_v6  ;;  %v329_v10 = vpack.c.bf16 %v142_v9, %v141_v8  ;;  %v333_v13 = vpack.c.bf16 %v144_v12, %v143_v11  ;;  %v145_v14 = vld [vmem:[%s486_s3 + $0x20] sm:$0xff]  ;;  %v146_v15 = vld [vmem:[%s486_s3 + $0x28] sm:$0xff]  ;;  %v147_v17 = vld [vmem:[%s486_s3 + $0x30] sm:$0xff]  ;;  %26 = vst.msk [vmem:[#allocation2] sm:$0xff] %vm25_vm0, %v381_v20  ;;  %s256_s22 = sshll.u32 %s382_s21, 4  ;;  %s257_s22 = int_to_ptr.vmem [resolvable:$true] %s256_s22 }
   0x7   :  { %v337_v16 = vpack.c.bf16 %v146_v15, %v145_v14  ;;  %v148_v18 = vld [vmem:[%s486_s3 + $0x38] sm:$0xff]  ;;  %v267_v21 = vld [vmem:[%s485_s2] ss:$0 sm:$0xff]  ;;  %s357_s23 = scalar_lea.vmem %s257_s22, 256  ;;  %p362_p1 = scmp.lt.s32.totalorder %s257_s22, %s257_s22 }
   0x8   :  { %330 = vmatprep.subr.bf16.mxu1 %v329_v10  ;;  %v341_v19 = vpack.c.bf16 %v148_v18, %v147_v17  ;;  %v274_v44 = vld [vmem:[%s487_s4] ss:$0 sm:$0xff]  ;;  %p358_p0 = scmp.ne.s32.totalorder %s257_s22, %s357_s23  ;;  %p363_p2 = scmp.lt.s32.totalorder %s357_s23, %s357_s23 }
   0x9   :  { %328 = vmatpush3.bf16.msra.mxu0 %v325_v6  ;;  %332 = vmatpush3.bf16.msra.mxu1 %v329_v10 }
   0xa   :  { %334 = vmatprep.subr.bf16.mxu1 %v333_v13  ;;  %p364_p3 = por %p363_p2, %p362_p1 }
   0xc   :  { %300 = vmatmul.mubr.msk.f32.vlgmr.msra.gmra.mrb[0].mxu0 %vm25_vm0, %v29_v7  ;;  %v140_v38 = vld [vmem:[#allocation2 + $0x8] sm:$0xff]  ;;  %p365_p4 = pnand %p364_p3, %p358_p0 }
   0xd   :  { %336 = vmatpush3.bf16.msra.mxu1 %v333_v13  ;;  %v139_v39 = vld [vmem:[#allocation2] sm:$0xff] }
   0xe   :  { %338 = vmatprep.subr.bf16.mxu1 %v337_v16 }
  0x11   :  { %340 = vmatpush3.bf16.msra.mxu1 %v337_v16 }
  0x12   :  { %342 = vmatprep.subr.bf16.mxu1 %v341_v19 }
  0x15   :  { %344 = vmatpush3.bf16.msra.mxu1 %v341_v19 }
  0xdf   :  { %v301_v22 = vpop.f32.mrb[0].mxu0 }
  0xe0   :  { %v120_v23 = vadd.f32 %v301_v22, %v267_v21  ;;  %v114_v24 = vpop.f32.mrb[1].mxu0 }
  0xe1   :  { %v115_v25 = vadd.f32 %v267_v21, %v114_v24 }
  0xe2   :  { %v271_v26 = vmul.f32 -1.702, %v120_v23 }
  0xe3   :  { %v270_v27 = vmul.f32 -1.702, %v115_v25 }
  0xe4   :  { %v129_v28 = vmul.f32 1.442695, %v271_v26 }
  0xe5   :  { %v127_v29 = vmul.f32 1.442695, %v270_v27 }
  0xe6   :  { %349 = vpow2.f32 %v129_v28 }
  0xe7   :  { %351 = vpow2.f32 %v127_v29 }
  0xf0   :  { %v350_v30 = vpop.eup %349 }
  0xf1   :  { %v352_v31 = vpop.eup %351  ;;  %v132_v32 = vadd.f32 1.0, %v350_v30 }
  0xf2   :  { %v131_v33 = vadd.f32 1.0, %v352_v31 }
  0xf3   :  { %353 = vrcp.f32 %v132_v32 }
  0xf4   :  { %355 = vrcp.f32 %v131_v33 }
  0xfd   :  { %v354_v34 = vpop.eup %353 }
  0xfe   :  { %v356_v35 = vpop.eup %355  ;;  %v138_v37 = vmul.f32 %v354_v34, %v120_v23 }
  0xff   :  { %v137_v36 = vmul.f32 %v356_v35, %v115_v25 }
 0x101   :  { %318 = vmatprep.mubr.msk.f32.mxu1 %vm149_vm1, %v137_v36 }
 0x102   :  { %319 = vmatmul.mubr.msk.f32.vlgmr.msra.gmra.mrb[0].mxu1 %vm149_vm1, %v138_v37 }
 0x1d5   :  { %v320_v40 = vpop.f32.mrb[0].mxu1 }
 0x1d6   :  { %v232_v41 = vadd.f32 %v320_v40, %v140_v38  ;;  %v222_v42 = vpop.f32.mrb[1].mxu1 }
 0x1d7   :  { %v231_v43 = vadd.f32 %v222_v42, %v139_v39 }
 0x1d8   :  { %234 = vst.msk [vmem:[#allocation2 + $0x8] sm:$0xff] %vm25_vm0, %v232_v41 }
 0x1d9   :  { %233 = vst.msk [vmem:[#allocation2] sm:$0xff] %vm25_vm0, %v231_v43 }
 0x1df   :  { %v239_v45 = vld [vmem:[#allocation2 + $0x8] sm:$0xff] }
 0x1e0   :  { %v238_v46 = vld [vmem:[#allocation2] sm:$0xff]  ;;  %v248_v47 = vadd.f32 %v274_v44, %v239_v45 }
 0x1e1   :  { %v247_v48 = vadd.f32 %v274_v44, %v238_v46 }
 0x1e2   :  { %250 = vst.msk [vmem:[#allocation3 + $0x8] sm:$0xff] %vm25_vm0, %v248_v47 }
 0x1e3   :  { %249 = vst.msk [vmem:[#allocation3] sm:$0xff] %vm25_vm0, %v247_v48 }
 0x1e4   :  { %368 = shalt.err (!%p365_p4)
}
 0x1e5   :  { %s369_s25 = scalar_lea.hbm %s488_s5, 256 }
 0x1e6   :  { %p370_p5 = scmp.ne.s32.totalorder %s488_s5, %s369_s25  ;;  %p373_p6 = scmp.lt.u32.totalorder %s369_s25, %s488_s5 }
 0x1e8   :  { %p375_p7 = pnand %p373_p6, %p370_p5 }
 0x1ea   :  { %378 = shalt.err (!%p375_p7)
}
 0x1eb   :  { %s383_s30 = smov 128   ;;  %s384_s1 = smov 8  }
 0x1ec   :  { %262 = dma.vmem_to_hbm [thread:$0]  %s257_s22, 256, %s488_s5, [#allocation4], %s383_s30, %s383_s30, %s384_s1  }
 0x1ed   :  { %379 = dma.done.wait [#allocation4], 256  }
 0x1ee   :  { %380 = vsyncadd [#allocation4], 4294967040 }
 0x1ef   :  { %266 = vsyncpa [#allocation4], 1 }

</bundles_post_ra>
